<compile_context>
chip_gen: v7x
topology: tpu7x:2x2x1
jax: 0.10.0
libtpu: 0.0.40
codegen_flags: <defaults>
</compile_context>

<pallas_src>
import jax
import jax.numpy as jnp
from jax.experimental import pallas as pl
from jax.experimental.pallas import tpu as pltpu


# ----------------------------- small helpers -----------------------------

def _round_up(x: int, m: int) -> int:
    return ((x + m - 1) // m) * m


def _vmem_capacity_bytes() -> int:
    # Per-generation VMEM (v5e/v6e: 128 MiB, v7x: 64 MiB). Fall back to the v7x floor.
    try:
        return int(pltpu.get_tpu_info().vmem_capacity_bytes)
    except Exception:
        return 64 * 1024 * 1024


# --------------------- Kernel 1: frame synthesis matmul -------------------
# frames[b, f, :] = sum_c x[b, c, f] * dft_kernel[c, :]  ==  (B*F, C) @ (C, n_fft)

def _frame_matmul_kernel(x_ref, w_ref, o_ref):
    o_ref[...] = jnp.dot(
        x_ref[...], w_ref[...], preferred_element_type=jnp.float32
    ).astype(o_ref.dtype)


def frame_synthesis_matmul(x: jax.Array, w: jax.Array, *, tm_target: int = 256) -> jax.Array:
    """(M, K) @ (K, N) -> (M, N) float32 on the MXU. Zero-pads to MXU-friendly shapes."""
    M, K = x.shape
    K2, N = w.shape
    assert K == K2
    Kp = _round_up(K, 128)
    Np = _round_up(N, 128)
    Mp = _round_up(M, 8)
    tm = min(Mp, _round_up(tm_target, 8))
    Mp = _round_up(Mp, tm)

    xp = jnp.pad(x.astype(jnp.float32), ((0, Mp - M), (0, Kp - K)))
    wp = jnp.pad(w.astype(jnp.float32), ((0, Kp - K), (0, Np - N)))

    out = pl.pallas_call(
        _frame_matmul_kernel,
        out_shape=jax.ShapeDtypeStruct((Mp, Np), jnp.float32),
        grid=(pl.cdiv(Mp, tm),),
        in_specs=[
            pl.BlockSpec((tm, Kp), lambda i: (i, 0)),     # frame tile
            pl.BlockSpec((Kp, Np), lambda i: (0, 0)),     # DFT kernel, resident
        ],
        out_specs=pl.BlockSpec((tm, Np), lambda i: (i, 0)),
        compiler_params=pltpu.CompilerParams(
            dimension_semantics=("parallel",),
            vmem_limit_bytes=min(_vmem_capacity_bytes() // 2, 64 * 1024 * 1024),
        ),
    )(xp, wp)
    return out[:M, :N]


# --------------------- Kernel 2: COLA scale (hot path) ---------------------
# out = waveform * coeff, lane-dense (rows x 1024) blocks, rows multiple of 8.

def _cola_scale_kernel(c_ref, x_ref, o_ref):
    c = c_ref[0, 0]                                      # hoisted scalar read (SMEM)
    o_ref[...] = (x_ref[...] * c).astype(o_ref.dtype)    # vld -> vmul -> vst


def cola_forward(waveform: jax.Array, coeff: jax.Array, *, lanes: int = 1024) -> jax.Array:
    """out = waveform * coeff. Works for any shape / length (pads wrapper-side)."""
    shape, dtype = waveform.shape, waveform.dtype
    flat = waveform.reshape(-1)
    n = flat.shape[0]
    itemsize = jnp.dtype(dtype).itemsize

    # Lane-dense 2D layout: last dim = `lanes` (multiple of 128), rows multiple of 8.
    rows = _round_up(pl.cdiv(n, lanes), 8)

    # VMEM-budget-derived block height: 2 in + 2 out double-buffered copies must fit
    # comfortably under the scoped limit on every generation (v7x has only 64 MiB).
    per_buffer = min(2 * 1024 * 1024, _vmem_capacity_bytes() // 32)
    br = max(8, (per_buffer // (lanes * itemsize)) // 8 * 8)
    br = min(br, rows)
    # Keep >= 2 grid steps when there is enough data so the parallel grid axis can
    # shard across v7x's 2 TensorCores (no effect on v5e/v6e).
    if rows >= 16 and rows // br < 2:
        br = max(8, (rows // 2) // 8 * 8)

    rows_p = _round_up(rows, br)
    total = rows_p * lanes
    if total != n:
        flat = jnp.pad(flat, (0, total - n))
    x2d = flat.reshape(rows_p, lanes)
    coeff2d = jnp.asarray(coeff, jnp.float32).reshape(1, 1)

    out = pl.pallas_call(
        _cola_scale_kernel,
        out_shape=jax.ShapeDtypeStruct((rows_p, lanes), dtype),
        grid=(pl.cdiv(rows_p, br),),
        in_specs=[
            pl.BlockSpec(memory_space=pltpu.SMEM),            # (1, 1) coeff scalar
            pl.BlockSpec((br, lanes), lambda i: (i, 0)),      # lane-dense waveform tile
        ],
        out_specs=pl.BlockSpec((br, lanes), lambda i: (i, 0)),
        compiler_params=pltpu.CompilerParams(dimension_semantics=("parallel",)),
    )(coeff2d, x2d)
    return out.reshape(-1)[:n].reshape(shape)


# --------------------------- init-time buffers -----------------------------

def _window_pad(window: jax.Array, n_fft: int) -> jax.Array:
    wl = window.shape[0]
    if wl < n_fft:
        d = n_fft - wl
        window = jnp.pad(window, (d // 2, d - d // 2))
    elif wl > n_fft:
        d = wl - n_fft
        window = window[d // 2: d // 2 + n_fft]
    return window


def _build_istft_kernel(n_fft: int, window: jax.Array) -> jax.Array:
    """Real-valued ISTFT synthesis matrix, shape (2*(n_fft//2+1), n_fft) — '(ri f) n' layout."""
    # TODO(synk): init-time DFT-matrix construction (jnp.fft.rfft of eye) stays in plain JAX;
    # it builds a constant buffer once and is not on the forward hot path.
    freq = n_fft // 2 + 1
    dftm = jnp.fft.rfft(jnp.eye(n_fft, dtype=jnp.float32), axis=-1).T    # (freq, n_fft) complex
    dftm = dftm * window[None, :]
    k = jnp.concatenate([jnp.real(dftm), jnp.imag(dftm)], axis=0)        # (2*freq, n_fft)
    scale = jnp.ones((2 * freq,), jnp.float32)
    scale = scale.at[1:(n_fft + 1) // 2].set(2.0)
    scale = scale.at[(n_fft + 2) // 2:].set(2.0)
    return (k.astype(jnp.float32) * scale[:, None]) / n_fft


def _overlap_add(frames: jax.Array, hop: int) -> jax.Array:
    """frames: (B, F, n_fft) -> (B, (F-1)*hop + n_fft): conv_transpose1d-style overlap-add."""
    # TODO(synk): the strided scatter-add over overlapping windows has no rectangular
    # BlockSpec expression; kept in plain JAX as ceil(n_fft/hop) shifted adds.
    B, F, n_fft = frames.shape
    t_out = (F - 1) * hop + n_fft
    nchunks = -(-n_fft // hop)
    wav = jnp.zeros((B, t_out + hop), frames.dtype)
    for r in range(nchunks):
        w = min(hop, n_fft - r * hop)
        chunk = frames[:, :, r * hop: r * hop + w]
        if w < hop:
            chunk = jnp.pad(chunk, ((0, 0), (0, 0), (0, hop - w)))
        wav = wav.at[:, r * hop: r * hop + F * hop].add(chunk.reshape(B, F * hop))
    return wav[:, :t_out]


# ----------------------------- module wrapper ------------------------------

class ISTFTPallas:
    """Pallas-backed equivalent of the PyTorch ISTFTModule (normalization='cola')."""

    def __init__(self, n_fft: int, win_length=None, hop_length=None, window=None):
        self.n_fft = n_fft
        self.win_length = win_length or n_fft
        self.hop_length = hop_length or n_fft // 4
        if window is None:
            # torch.hann_window default (periodic)
            t = jnp.arange(self.win_length, dtype=jnp.float32)
            window = 0.5 - 0.5 * jnp.cos(2.0 * jnp.pi * t / self.win_length)
        window = _window_pad(window.astype(jnp.float32), n_fft)
        self.kernel = _build_istft_kernel(n_fft, window)               # (2*freq, n_fft) buffer
        # COLA coefficient computed in plain JAX at init (no dedicated kernel launch).
        self._coeff = jnp.reshape(
            self.hop_length / jnp.sum(window.astype(jnp.float32) ** 2), (1, 1)
        )
        # TODO(synk): NOLA normalization branch (conv_transpose of window**2) not implemented.

    def __call__(self, x: jax.Array) -> jax.Array:
        squeeze = x.ndim == 3
        if squeeze:
            x = x[None]
        B, freq, F, ri = x.shape
        assert ri == 2 and freq == self.n_fft // 2 + 1
        c = 2 * freq
        # '... freq n ri -> ... (ri freq) n'; frames become rows of the synthesis matmul.
        xf = jnp.transpose(x, (0, 2, 3, 1)).reshape(B * F, c)          # (B*F, 2*freq)
        frames = frame_synthesis_matmul(xf, self.kernel).reshape(B, F, self.n_fft)
        wav = _overlap_add(frames, self.hop_length)                    # (B, (F-1)*hop + n_fft)
        out = cola_forward(wav, self._coeff)
        return out[0] if squeeze else out


# ----------------------------------- demo ----------------------------------

if __name__ == "__main__":
    key = jax.random.PRNGKey(0)
    k_x, k_w = jax.random.split(key)

    n_fft, hop_length = 16, 4
    freq = n_fft // 2 + 1            # 9
    B, n_frames = 2, 8

    mod = ISTFTPallas(n_fft=n_fft, hop_length=hop_length)
    x = jax.random.normal(k_x, (B, freq, n_frames, 2), dtype=jnp.float32)

    out = jax.block_until_ready(mod(x))

    # ---- plain-JAX reference (per-frame overlap-add, high-precision matmul) ----
    xf = jnp.transpose(x, (0, 2, 3, 1)).reshape(B, n_frames, 2 * freq)
    frames_ref = jnp.einsum("bfc,cn->bfn", xf, mod.kernel,
                            precision=jax.lax.Precision.HIGHEST)
    t_out = (n_frames - 1) * hop_length + n_fft
    ref = jnp.zeros((B, t_out), jnp.float32)
    for f in range(n_frames):
        ref = ref.at[:, f * hop_length: f * hop_length + n_fft].add(frames_ref[:, f, :])
    ref = ref * mod._coeff[0, 0]

    assert out.shape == (B, t_out) and out.dtype == jnp.float32
    err = jnp.max(jnp.abs(out - ref))
    assert jnp.allclose(out, ref, rtol=1e-3, atol=1e-5), f"mismatch vs reference: {err}"

    # Also exercise the standalone COLA-scale kernel (the normalization hot path).
    wav = jax.random.normal(k_w, (2, 256), dtype=jnp.float32)
    scaled = jax.block_until_ready(cola_forward(wav, mod._coeff))
    assert jnp.allclose(scaled, wav * mod._coeff[0, 0], rtol=1e-6, atol=1e-6)

    print("KERNEL_OK")
</pallas_src>

<mosaic_0001>
module attributes {stable_mosaic.version = 11 : i64} {
  func.func @_frame_matmul_kernel(%arg0: i32, %arg1: memref<16x128xf32, #tpu.memory_space<vmem>>, %arg2: memref<128x128xf32, #tpu.memory_space<vmem>>, %arg3: memref<16x128xf32, #tpu.memory_space<vmem>>) attributes {dimension_semantics = [#tpu.dimension_semantics<parallel>], iteration_bounds = array<i64: 1>, scalar_prefetch = 0 : i64, scratch_operands = 0 : i64, tpu.core_type = #tpu.core_type<tc>, window_params = [{transform_indices = @transform_0, window_bounds = array<i64: 16, 128>}, {pipeline_mode = #tpu.pipeline_mode<synchronous>, transform_indices = @transform_1, window_bounds = array<i64: 128, 128>}, {transform_indices = @transform_2, window_bounds = array<i64: 16, 128>}]} {
    %c0 = arith.constant 0 : index
    %c0_0 = arith.constant 0 : index
    %0 = vector.load %arg1[%c0, %c0_0] : memref<16x128xf32, #tpu.memory_space<vmem>>, vector<16x128xf32>
    %c0_1 = arith.constant 0 : index
    %c0_2 = arith.constant 0 : index
    %1 = vector.load %arg2[%c0_1, %c0_2] : memref<128x128xf32, #tpu.memory_space<vmem>>, vector<128x128xf32>
    %cst = arith.constant dense<0.000000e+00> : vector<16x128xf32>
    %2 = tpu.matmul %0, %1, %cst {dimension_numbers = #tpu.dot_dimension_numbers<[1], [0], [0], [1], [0, 0, 1, 1], [], []>} : vector<16x128xf32>, vector<128x128xf32>, vector<16x128xf32> -> vector<16x128xf32>
    %c0_3 = arith.constant 0 : index
    %c0_4 = arith.constant 0 : index
    %3 = vector.load %arg3[%c0_3, %c0_4] : memref<16x128xf32, #tpu.memory_space<vmem>>, vector<16x128xf32>
    tpu.vector_store %arg3[%c0_3, %c0_4], %2 {strides = array<i32>} : memref<16x128xf32, #tpu.memory_space<vmem>>, vector<16x128xf32>,
    return
  }
  func.func @transform_0(%arg0: i32) -> (i32, i32) {
    %c0_i32 = arith.constant 0 : i32
    %c0_i32_0 = arith.constant 0 : i32
    return %arg0, %c0_i32 : i32, i32
  }
  func.func @transform_1(%arg0: i32) -> (i32, i32) {
    %c0_i32 = arith.constant 0 : i32
    %c0_i32_0 = arith.constant 0 : i32
    %c0_i32_1 = arith.constant 0 : i32
    return %c0_i32, %c0_i32_0 : i32, i32
  }
  func.func @transform_2(%arg0: i32) -> (i32, i32) {
    %c0_i32 = arith.constant 0 : i32
    %c0_i32_0 = arith.constant 0 : i32
    return %arg0, %c0_i32 : i32, i32
  }
}

</mosaic_0001>

<bundles_post_ra>
// kernel: tpu_custom_call.1
= control target key start
LH: loop header
LB: loop body
LE: loop exit
PB: predicated region body
PF: predicated region fallthrough
CT: control target
= control target key end

     0   :  { %7 = vsyncpa [#allocation3], 0  ;;  %s380_s0 = inlined_call_operand.hbm [shape: f32[16,128], index: 0, kind: input, shape index: {}]   ;;  %s381_s1 = inlined_call_operand.hbm [shape: f32[128,128], index: 1, kind: input, shape index: {}]   ;;  %s382_s2 = inlined_call_operand.hbm [shape: f32[16,128], index: 2, kind: output, shape index: {}]  }
   0x1   :  { %8 = vsyncpa [#allocation6], 0 }
   0x2   :  { %9 = vsyncpa [#allocation4], 0  ;;  %s315_s9 = smov [#allocation2]   ;;  %s243_s13 = scalar_lea.hbm %s380_s0, 256 }
   0x3   :  { %s15_s10 = sshll.u32 %s315_s9, 4  ;;  %p244_p0 = scmp.ne.s32.totalorder %s380_s0, %s243_s13  ;;  %s16_s10 = int_to_ptr.vmem [resolvable:$true] %s15_s10 }
   0x4   :  { %p247_p1 = scmp.lt.u32.totalorder %s243_s13, %s380_s0 }
   0x6   :  { %p249_p2 = pnand %p247_p1, %p244_p0 }
   0x8   :  { %252 = shalt.err (!%p249_p2)
}
   0x9   :  { %s253_s18 = scalar_lea.vmem %s16_s10, 256  ;;  %p258_p4 = scmp.lt.s32.totalorder %s16_s10, %s16_s10 }
   0xa   :  { %p254_p3 = scmp.ne.s32.totalorder %s16_s10, %s253_s18  ;;  %p259_p5 = scmp.lt.s32.totalorder %s253_s18, %s253_s18 }
   0xc   :  { %p260_p6 = por %p259_p5, %p258_p4 }
   0xe   :  { %p261_p7 = pnand %p260_p6, %p254_p3 }
  0x10   :  { %264 = shalt.err (!%p261_p7)
}
  0x11   :  { %s316_s19 = smov 128   ;;  %s317_s20 = smov 8  }
  0x12   :  { %21 = dma.hbm_to_vmem [thread:$0]  %s380_s0, 256, %s16_s10, [#allocation3], %s316_s19, %s316_s19, %s317_s20  }
  0x13   :  { %s318_s23 = smov [#allocation5]   ;;  %s265_s27 = scalar_lea.hbm %s381_s1, 2048 }
  0x14   :  { %s27_s24 = sshll.u32 %s318_s23, 4  ;;  %p266_p8 = scmp.ne.s32.totalorder %s381_s1, %s265_s27  ;;  %s28_s24 = int_to_ptr.vmem [resolvable:$true] %s27_s24 }
  0x15   :  { %p269_p9 = scmp.lt.u32.totalorder %s265_s27, %s381_s1 }
  0x17   :  { %p271_p10 = pnand %p269_p9, %p266_p8 }
  0x19   :  { %274 = shalt.err (!%p271_p10)
}
  0x1a   :  { %s275_s4 = scalar_lea.vmem %s28_s24, 2048  ;;  %p280_p12 = scmp.lt.s32.totalorder %s28_s24, %s28_s24 }
  0x1b   :  { %p276_p11 = scmp.ne.s32.totalorder %s28_s24, %s275_s4  ;;  %p281_p13 = scmp.lt.s32.totalorder %s275_s4, %s275_s4 }
  0x1d   :  { %p282_p0 = por %p281_p13, %p280_p12 }
  0x1f   :  { %p283_p1 = pnand %p282_p0, %p276_p11 }
  0x21   :  { %286 = shalt.err (!%p283_p1)
}
  0x22   :  { %33 = dma.hbm_to_vmem [thread:$0]  %s381_s1, 2048, %s28_s24, [#allocation6], %s316_s19, %s316_s19, %s317_s20  }
  0x23   :  { %309 = dma.done.wait [#allocation3], 256  }
  0x24   :  { %310 = vsyncadd [#allocation3], 4294967040 }
  0x25   :  { %311 = dma.done.wait [#allocation6], 2048  }
  0x26   :  { %312 = vsyncadd [#allocation6], 4294965248  ;;  %v42_v0 = vld [vmem:[#allocation5] sm:$0xff]  ;;  %v43_v1 = vld [vmem:[#allocation5 + $0x8] sm:$0xff]  ;;  %s319_s1 = smov [#allocation7]  }
  0x27   :  { %v44_v2 = vld [vmem:[#allocation5 + $0x10] sm:$0xff]  ;;  %v206_v3 = vpack.c.bf16 %v43_v1, %v42_v0  ;;  %v45_v4 = vld [vmem:[#allocation5 + $0x18] sm:$0xff]  ;;  %v46_v6 = vld [vmem:[#allocation5 + $0x20] sm:$0xff]  ;;  %s140_s6 = sshll.u32 %s319_s1, 4  ;;  %s141_s6 = int_to_ptr.vmem [resolvable:$true] %s140_s6 }
  0x28   :  { %v210_v5 = vpack.c.bf16 %v45_v4, %v44_v2  ;;  %v47_v7 = vld [vmem:[#allocation5 + $0x28] sm:$0xff]  ;;  %v40_v9 = vld [vmem:[#allocation2] sm:$0xff]  ;;  %v49_v11 = vld [vmem:[#allocation5 + $0x38] sm:$0xff]  ;;  %s287_s7 = scalar_lea.vmem %s141_s6, 256  ;;  %p292_p3 = scmp.lt.s32.totalorder %s141_s6, %s141_s6 }
  0x29   :  { %207 = vmatprep.subr.bf16.mxu0 %v206_v3  ;;  %v214_v8 = vpack.c.bf16 %v47_v7, %v46_v6  ;;  %v48_v10 = vld [vmem:[#allocation5 + $0x30] sm:$0xff]  ;;  %203 = vmatprep.mubr.f32.mxu0 %v40_v9  ;;  %v50_v13 = vld [vmem:[#allocation5 + $0x40] sm:$0xff]  ;;  %v51_v14 = vld [vmem:[#allocation5 + $0x48] sm:$0xff]  ;;  %p288_p2 = scmp.ne.s32.totalorder %s141_s6, %s287_s7  ;;  %p293_p4 = scmp.lt.s32.totalorder %s287_s7, %s287_s7 }
  0x2a   :  { %209 = vmatpush3.bf16.msra.mxu0 %v206_v3  ;;  %v218_v12 = vpack.c.bf16 %v49_v11, %v48_v10  ;;  %v222_v15 = vpack.c.bf16 %v51_v14, %v50_v13  ;;  %v52_v16 = vld [vmem:[#allocation5 + $0x50] sm:$0xff]  ;;  %v53_v17 = vld [vmem:[#allocation5 + $0x58] sm:$0xff]  ;;  %v54_v19 = vld [vmem:[#allocation5 + $0x60] sm:$0xff] }
  0x2b   :  { %211 = vmatprep.subr.bf16.mxu0 %v210_v5  ;;  %v226_v18 = vpack.c.bf16 %v53_v17, %v52_v16  ;;  %v55_v20 = vld [vmem:[#allocation5 + $0x68] sm:$0xff]  ;;  %v56_v22 = vld [vmem:[#allocation5 + $0x70] sm:$0xff]  ;;  %v57_v23 = vld [vmem:[#allocation5 + $0x78] sm:$0xff]  ;;  %p294_p5 = por %p293_p4, %p292_p3 }
  0x2c   :  { %v230_v21 = vpack.c.bf16 %v55_v20, %v54_v19  ;;  %v234_v24 = vpack.c.bf16 %v57_v23, %v56_v22  ;;  %v41_v25 = vld [vmem:[#allocation2 + $0x8] sm:$0xff] }
  0x2d   :  { %p295_p6 = pnand %p294_p5, %p288_p2 }
  0x2e   :  { %213 = vmatpush3.bf16.msra.mxu0 %v210_v5 }
  0x2f   :  { %215 = vmatprep.subr.bf16.mxu0 %v214_v8 }
  0x32   :  { %217 = vmatpush3.bf16.msra.mxu0 %v214_v8 }
  0x33   :  { %219 = vmatprep.subr.bf16.mxu0 %v218_v12 }
  0x36   :  { %221 = vmatpush3.bf16.msra.mxu0 %v218_v12 }
  0x37   :  { %223 = vmatprep.subr.bf16.mxu0 %v222_v15 }
  0x3a   :  { %225 = vmatpush3.bf16.msra.mxu0 %v222_v15 }
  0x3b   :  { %227 = vmatprep.subr.bf16.mxu0 %v226_v18 }
  0x3e   :  { %229 = vmatpush3.bf16.msra.mxu0 %v226_v18 }
  0x3f   :  { %231 = vmatprep.subr.bf16.mxu0 %v230_v21 }
  0x42   :  { %233 = vmatpush3.bf16.msra.mxu0 %v230_v21 }
  0x43   :  { %235 = vmatprep.subr.bf16.mxu0 %v234_v24 }
  0x46   :  { %237 = vmatpush3.bf16.msra.mxu0 %v234_v24 }
  0x49   :  { %204 = vmatmul.mubr.f32.vlgmr.msra.gmra.mrb[0].mxu0 %v41_v25 }
 0x11c   :  { %v205_v26 = vpop.f32.mrb[0].mxu0 }
 0x11d   :  { %134 = vst [vmem:[#allocation7 + $0x8] sm:$0xff] %v205_v26  ;;  %v124_v27 = vpop.f32.mrb[1].mxu0 }
 0x11e   :  { %133 = vst [vmem:[#allocation7] sm:$0xff] %v124_v27 }
 0x11f   :  { %298 = shalt.err (!%p295_p6)
}
 0x120   :  { %s299_s10 = scalar_lea.hbm %s382_s2, 256 }
 0x121   :  { %p300_p7 = scmp.ne.s32.totalorder %s382_s2, %s299_s10  ;;  %p303_p8 = scmp.lt.u32.totalorder %s299_s10, %s382_s2 }
 0x123   :  { %p305_p9 = pnand %p303_p8, %p300_p7 }
 0x125   :  { %308 = shalt.err (!%p305_p9)
}
 0x126   :  { %146 = dma.vmem_to_hbm [thread:$0]  %s141_s6, 256, %s382_s2, [#allocation4], %s316_s19, %s316_s19, %s317_s20  }
 0x127   :  { %313 = dma.done.wait [#allocation4], 256  }
 0x128   :  { %314 = vsyncadd [#allocation4], 4294967040 }
 0x129   :  { %150 = vsyncpa [#allocation3], 1 }
 0x12a   :  { %151 = vsyncpa [#allocation6], 1 }
 0x12b   :  { %152 = vsyncpa [#allocation4], 1 }

</bundles_post_ra>
